<compile_context>
chip_gen: v7x
topology: tpu7x:2x2x1
jax: 0.10.0
libtpu: 0.0.40
codegen_flags: <defaults>
</compile_context>

<pallas_src>
import functools

import jax
import jax.numpy as jnp
import numpy as np
from jax import lax
from jax.experimental import pallas as pl
from jax.experimental.pallas import tpu as pltpu


def _make_kernel(K, stride, dilation, TL):
    def kernel(x_ref, w_ref, shift_ref, o_ref):
        # x_ref:     (1, 1, C_in, WIN)  input window (with halo) for this tile
        # w_ref:     (C_out, K*C_in)    BN-folded weights, tap-major flattening
        # shift_ref: (C_out, 1)         BN-folded shift (conv bias included)
        # o_ref:     (1, C_out, TL)     output tile
        taps = []
        for k in range(K):  # K static & small -> fully unrolled slicing
            start = k * dilation
            if stride == 1:
                taps.append(x_ref[0, 0, :, pl.ds(start, TL)])
            else:
                taps.append(x_ref[0, 0, :, pl.ds(start, TL, stride=stride)])
        # Stack taps along sublanes -> (K*C_in, TL); one MXU matmul.
        stacked = taps[0] if K == 1 else jnp.concatenate(taps, axis=0)
        acc = jnp.dot(w_ref[...], stacked, preferred_element_type=jnp.float32)
        y = jnp.maximum(acc + shift_ref[...], 0.0)   # BN shift + ReLU
        o_ref[0, :, :] = y.astype(o_ref.dtype)

    return kernel


def conv1d_bn_chomp_relu(x, w, b, gamma, beta, run_mean, run_var, *,
                         stride, dilation, padding, eps=1e-5,
                         time_tile=1024, compute_dtype=None):
    """x: (N, C_in, L).  Returns (N, C_out, L_final) float32."""
    N, C_in, L = x.shape
    C_out, _, K = w.shape

    # PyTorch Chomp1d(padding, symmetric=True): drop padding//2 frames per side.
    chomp = padding // 2 if padding > 0 else 0
    L_conv = (L + 2 * padding - dilation * (K - 1) - 1) // stride + 1
    L_final = L_conv - 2 * chomp
    assert L_final > 0

    # ---- time tiling (lane-dense output blocks) --------------------------
    if L_final <= time_tile:
        TL, T = L_final, 1
    else:
        TL = max(128, (time_tile // 128) * 128)   # keep a multiple of 128
        T = -(-L_final // TL)
    L_tiles = T * TL

    # Output frame t reads original input index (t+chomp)*stride + k*dil - padding.
    # Pad only what the chomped output actually touches (half of PyTorch's pad
    # is dead), and enough on the right to cover the (possibly) padded tiles.
    left = max(0, padding - chomp * stride)
    base = left - padding + chomp * stride              # >= 0 by construction
    WIN = (TL - 1) * stride + (K - 1) * dilation + 1    # per-tile input window
    needed = base + (L_tiles - 1) * stride + (K - 1) * dilation + 1
    right = max(0, needed - (left + L))
    x_eff = jnp.pad(x, ((0, 0), (0, 0), (left, right)))

    # Per-tile overlapping windows (halo duplicated) -> non-overlapping blocks
    # for BlockSpec auto-pipelining. Single preprocessing pass (replaces the
    # old full-width jnp.pad pass).
    win_idx = (base + jnp.arange(T)[:, None] * TL * stride
               + jnp.arange(WIN)[None, :])              # (T, WIN)
    x_win = jnp.take(x_eff, win_idx, axis=2)            # (N, C_in, T, WIN)
    x_win = jnp.transpose(x_win, (0, 2, 1, 3))          # (N, T, C_in, WIN)

    # ---- fold eval-mode BN + conv bias into weights / shift --------------
    scale = gamma / jnp.sqrt(run_var + eps)
    shift = (b - run_mean) * scale + beta
    # Tap-major flattening: row k*C_in + c  <->  w[o, c, k] * scale[o]
    w_f = (w * scale[:, None, None]).transpose(0, 2, 1).reshape(C_out, K * C_in)
    shift2 = shift.reshape(C_out, 1).astype(jnp.float32)

    cdt = compute_dtype if compute_dtype is not None else x.dtype
    x_win = x_win.astype(cdt)
    w_f = w_f.astype(cdt)

    kernel = _make_kernel(K, stride, dilation, TL)

    grid_spec = pltpu.PrefetchScalarGridSpec(
        num_scalar_prefetch=0,
        grid=(N, T),
        in_specs=[
            pl.BlockSpec((1, 1, C_in, WIN), lambda n, t: (n, t, 0, 0)),
            pl.BlockSpec((C_out, K * C_in), lambda n, t: (0, 0)),
            pl.BlockSpec((C_out, 1), lambda n, t: (0, 0)),
        ],
        out_specs=pl.BlockSpec((1, C_out, TL), lambda n, t: (n, 0, t)),
    )

    # Explicit VMEM budget: 2x double-buffered in/out blocks + weights +
    # im2col operand, floored at the 32 MiB scoped default and capped well
    # below v7x's 64 MiB physical VMEM.
    isz = jnp.dtype(cdt).itemsize
    est = (2 * C_in * WIN * isz + 2 * C_out * TL * 4
           + 2 * C_out * K * C_in * isz + 2 * C_out * 4
           + 4 * K * C_in * TL * 4)
    vmem_limit = int(min(max(4 * est, 32 * 1024 * 1024), 56 * 1024 * 1024))

    out = pl.pallas_call(
        kernel,
        out_shape=jax.ShapeDtypeStruct((N, C_out, L_tiles), jnp.float32),
        grid_spec=grid_spec,
        compiler_params=pltpu.CompilerParams(
            dimension_semantics=("parallel", "parallel"),
            vmem_limit_bytes=vmem_limit,
        ),
    )(x_win, w_f, shift2)

    if L_tiles != L_final:
        out = out[:, :, :L_final]
    return out


def _reference(x, w, b, gamma, beta, run_mean, run_var,
               *, stride, dilation, padding, eps=1e-5):
    y = lax.conv_general_dilated(
        x, w,
        window_strides=(stride,),
        padding=[(padding, padding)],
        rhs_dilation=(dilation,),
        dimension_numbers=("NCH", "OIH", "NCH"),
    )
    y = y + b[None, :, None]
    scale = gamma / jnp.sqrt(run_var + eps)
    shift = beta - run_mean * scale
    y = y * scale[None, :, None] + shift[None, :, None]
    if padding > 0:
        c = padding // 2
        y = y[:, :, c:-c]
    return jnp.maximum(y, 0.0)


if __name__ == "__main__":
    key = jax.random.PRNGKey(0)

    def run_case(N, C_in, C_out, L, K, stride, dilation, padding, time_tile):
        ks = jax.random.split(key, 7)
        x = jax.random.normal(ks[0], (N, C_in, L), jnp.float32)
        w = jax.random.normal(ks[1], (C_out, C_in, K), jnp.float32) * 0.3
        b = jax.random.normal(ks[2], (C_out,), jnp.float32) * 0.1
        gamma = 1.0 + 0.1 * jax.random.normal(ks[3], (C_out,), jnp.float32)
        beta = 0.1 * jax.random.normal(ks[4], (C_out,), jnp.float32)
        run_mean = 0.1 * jax.random.normal(ks[5], (C_out,), jnp.float32)
        run_var = jnp.abs(jax.random.normal(ks[6], (C_out,), jnp.float32)) + 0.5

        out = conv1d_bn_chomp_relu(x, w, b, gamma, beta, run_mean, run_var,
                                   stride=stride, dilation=dilation,
                                   padding=padding, time_tile=time_tile)
        out = jax.block_until_ready(out)
        ref = _reference(x, w, b, gamma, beta, run_mean, run_var,
                         stride=stride, dilation=dilation, padding=padding)
        np.testing.assert_allclose(np.asarray(out), np.asarray(ref),
                                   rtol=1e-4, atol=1e-4)
        assert out.shape == ref.shape

    # Small TCN block config (module default path: dwpw=False, act='relu').
    run_case(N=2, C_in=4, C_out=8, L=16, K=3, stride=1, dilation=1,
             padding=2, time_tile=1024)
    # Longer dilated sequence exercising the lane-dense time-tiled path (T>1).
    run_case(N=2, C_in=4, C_out=8, L=512, K=3, stride=1, dilation=2,
             padding=4, time_tile=128)

    print("KERNEL_OK")
</pallas_src>

<mosaic_0001>
module attributes {stable_mosaic.version = 11 : i64} {
  func.func @kernel(%arg0: i32, %arg1: i32, %arg2: memref<1x1x4x18xf32, #tpu.memory_space<vmem>>, %arg3: memref<8x12xf32, #tpu.memory_space<vmem>>, %arg4: memref<8x1xf32, #tpu.memory_space<vmem>>, %arg5: memref<1x8x16xf32, #tpu.memory_space<vmem>>) attributes {dimension_semantics = [#tpu.dimension_semantics<parallel>, #tpu.dimension_semantics<parallel>], iteration_bounds = array<i64: 2, 1>, scalar_prefetch = 0 : i64, scratch_operands = 0 : i64, tpu.core_type = #tpu.core_type<tc>, window_params = [{transform_indices = @transform_0, window_bounds = array<i64: 1, 1, 4, 18>}, {pipeline_mode = #tpu.pipeline_mode<synchronous>, transform_indices = @transform_1, window_bounds = array<i64: 8, 12>}, {pipeline_mode = #tpu.pipeline_mode<synchronous>, transform_indices = @transform_2, window_bounds = array<i64: 8, 1>}, {transform_indices = @transform_3, window_bounds = array<i64: 1, 8, 16>}]} {
    %c0 = arith.constant 0 : index
    %c0_0 = arith.constant 0 : index
    %c0_1 = arith.constant 0 : index
    %c0_2 = arith.constant 0 : index
    %0 = vector.load %arg2[%c0, %c0_0, %c0_1, %c0_2] : memref<1x1x4x18xf32, #tpu.memory_space<vmem>>, vector<1x1x4x16xf32>
    %1 = vector.shape_cast %0 : vector<1x1x4x16xf32> to vector<4x16xf32>
    %c0_3 = arith.constant 0 : index
    %c0_4 = arith.constant 0 : index
    %c0_5 = arith.constant 0 : index
    %c1 = arith.constant 1 : index
    %2 = vector.load %arg2[%c0_3, %c0_4, %c0_5, %c1] : memref<1x1x4x18xf32, #tpu.memory_space<vmem>>, vector<1x1x4x16xf32>
    %3 = vector.shape_cast %2 : vector<1x1x4x16xf32> to vector<4x16xf32>
    %c0_6 = arith.constant 0 : index
    %c0_7 = arith.constant 0 : index
    %c0_8 = arith.constant 0 : index
    %c2 = arith.constant 2 : index
    %4 = vector.load %arg2[%c0_6, %c0_7, %c0_8, %c2] : memref<1x1x4x18xf32, #tpu.memory_space<vmem>>, vector<1x1x4x16xf32>
    %5 = vector.shape_cast %4 : vector<1x1x4x16xf32> to vector<4x16xf32>
    %6 = tpu.concatenate %1, %3, %5 in 0 : vector<4x16xf32>, vector<4x16xf32>, vector<4x16xf32> -> vector<12x16xf32>
    %c0_9 = arith.constant 0 : index
    %c0_10 = arith.constant 0 : index
    %7 = vector.load %arg3[%c0_9, %c0_10] : memref<8x12xf32, #tpu.memory_space<vmem>>, vector<8x12xf32>
    %cst = arith.constant dense<0.000000e+00> : vector<8x16xf32>
    %8 = tpu.matmul %7, %6, %cst {dimension_numbers = #tpu.dot_dimension_numbers<[1], [0], [0], [1], [0, 0, 1, 1], [], []>} : vector<8x12xf32>, vector<12x16xf32>, vector<8x16xf32> -> vector<8x16xf32>
    %c0_11 = arith.constant 0 : index
    %c0_12 = arith.constant 0 : index
    %9 = vector.load %arg4[%c0_11, %c0_12] : memref<8x1xf32, #tpu.memory_space<vmem>>, vector<8x1xf32>
    %10 = vector.broadcast %9 : vector<8x1xf32> to vector<8x16xf32>
    %11 = arith.addf %8, %10 : vector<8x16xf32>
    %cst_13 = arith.constant 0.000000e+00 : f32
    %12 = vector.broadcast %cst_13 : f32 to vector<8x16xf32>
    %13 = arith.maximumf %11, %12 : vector<8x16xf32>
    %c0_14 = arith.constant 0 : index
    %c0_15 = arith.constant 0 : index
    %c0_16 = arith.constant 0 : index
    %14 = vector.load %arg5[%c0_14, %c0_15, %c0_16] : memref<1x8x16xf32, #tpu.memory_space<vmem>>, vector<1x8x16xf32>
    %15 = vector.shape_cast %14 : vector<1x8x16xf32> to vector<8x16xf32>
    %16 = vector.shape_cast %13 : vector<8x16xf32> to vector<1x8x16xf32>
    tpu.vector_store %arg5[%c0_14, %c0_15, %c0_16], %16 {strides = array<i32>} : memref<1x8x16xf32, #tpu.memory_space<vmem>>, vector<1x8x16xf32>,
    return
  }
  func.func @transform_0(%arg0: i32, %arg1: i32) -> (i32, i32, i32, i32) {
    %c0_i32 = arith.constant 0 : i32
    %c0_i32_0 = arith.constant 0 : i32
    %c0_i32_1 = arith.constant 0 : i32
    return %arg0, %arg1, %c0_i32, %c0_i32_0 : i32, i32, i32, i32
  }
  func.func @transform_1(%arg0: i32, %arg1: i32) -> (i32, i32) {
    %c0_i32 = arith.constant 0 : i32
    %c0_i32_0 = arith.constant 0 : i32
    %c0_i32_1 = arith.constant 0 : i32
    return %c0_i32, %c0_i32_0 : i32, i32
  }
  func.func @transform_2(%arg0: i32, %arg1: i32) -> (i32, i32) {
    %c0_i32 = arith.constant 0 : i32
    %c0_i32_0 = arith.constant 0 : i32
    %c0_i32_1 = arith.constant 0 : i32
    return %c0_i32, %c0_i32_0 : i32, i32
  }
  func.func @transform_3(%arg0: i32, %arg1: i32) -> (i32, i32, i32) {
    %c0_i32 = arith.constant 0 : i32
    %c0_i32_0 = arith.constant 0 : i32
    return %arg0, %c0_i32, %arg1 : i32, i32, i32
  }
}

</mosaic_0001>

<bundles_post_ra>
// kernel: tpu_custom_call.1
= control target key start
LH: loop header
LB: loop body
LE: loop exit
PB: predicated region body
PF: predicated region fallthrough
CT: control target
= control target key end

     0   :  { %8 = vsyncpa [#allocation3], 0  ;;  %s796_s0 = inlined_call_operand.vmem [shape: f32[2,1,4,18], index: 0, kind: input, shape index: {}]   ;;  %s797_s1 = inlined_call_operand.hbm [shape: f32[8,12], index: 1, kind: input, shape index: {}]   ;;  %s798_s2 = inlined_call_operand.vmem [shape: f32[8,1], index: 2, kind: input, shape index: {}]   ;;  %s799_s3 = inlined_call_operand.hbm [shape: f32[2,8,16], index: 3, kind: output, shape index: {}]  }
   0x1   :  { %9 = vsyncpa [#allocation4], 0 }
   0x2   :  { %11 = vsyncpa [#allocation4 + $0x1], 0  ;;  %s643_s12 = smov 0   ;;  %s645_s13 = smov 0  }
   0x3   :  { %s647_s14 = smov 0   ;;  %s649_s15 = smov 0  }
   0x4   :  { %s651_s16 = smov 0   ;;  %s653_s17 = smov 0  }
   0x5 LB: > { %s398_s18 = sadd.s32 4294967295, %s612_s17   ;;  %s399_s19 = sadd.s32 4294967294, %s612_s17   ;;  %s612_s17 = sphi %s653_s17, %s17_s17   ;;  %s608_s16 = sphi %s651_s16, %s817_s16   ;;  %s604_s15 = sphi %s649_s15, %s816_s15   ;;  %s600_s14 = sphi %s647_s14, %s815_s14   ;;  %s596_s13 = sphi %s645_s13, %s814_s13   ;;  %s592_s12 = sphi %s643_s12, %s813_s12  }
   0x6   : > { %s29_s20 = sadd.s32 1, %s608_s16  ;;  %s108_s21 = sadd.s32 1, %s600_s14 }
   0x7   : > { %p31_p0 = scmp.ge.s32.totalorder %s29_s20, 2  ;;  %p118_p1 = scmp.ne.s32.totalorder %s600_s14, %s596_s13 }
   0x8   : > { %p119_p2 = scmp.eq.s32.totalorder %s398_s18, 1  ;;  %p124_p3 = scmp.ne.s32.totalorder %s596_s13, %s592_s12 }
   0x9   : > { %s819_s20 = smov (%p31_p0, %s29_s20), 0  ;;  %p125_p5 = scmp.eq.s32.totalorder %s399_s19, 1 }
   0xa   : > { %p683_p4 = por %p119_p2, %p118_p1  ;;  %s103_s23 = ssub.s32 %s608_s16, %s819_s20 }
   0xb   : > { %p400_p6 = scmp.ge.s32.totalorder %s612_s17, 1  ;;  %p106_p7 = scmp.eq.s32.totalorder %s103_s23, 0 }
   0xc   : > { %s804_s22 = scalar_select %p683_p4, 1, 0 }
   0xd   : > { %p690_p8 = por %p125_p5, %p124_p3  ;;  %p132_p9 = scmp.lt.s32.totalorder %s612_s17, 3 }
   0xe   : > { %s696_s25 = scalar_select %p106_p7, %s600_s14, %s108_s21  }
   0xf   : > { %s805_s24 = scalar_select %p690_p8, 1, 0 }
  0x10   : > { %p698_p10 = pnand %p400_p6, %p132_p9  ;;  %p702_p11 = scmp.eq.s32.totalorder %s398_s18, 0 }
  0x11   : > { %s614_s28 = smov [#allocation2]   ;;  %s502_s6 = scalar_lea.hbm %s797_s1, 128 }
  0x12   : > { %s806_s26 = scalar_select %p698_p10, 1, 0 }
  0x13   : > { %s807_s27 = scalar_select %p702_p11, 1, 0 }
  0x14   : > { %p433_p12 = pneg %p698_p10  ;;  %s145_s29 = sshll.u32 %s614_s28, 4  ;;  %s146_s29 = int_to_ptr.vmem [resolvable:$true] %s145_s29 }
  0x15   : > { %p503_p0 = scmp.ne.s32.totalorder %s797_s1, %s502_s6  ;;  %p509_p5 = scmp.lt.u32.totalorder %s502_s6, %s797_s1 }
  0x16   : > { %p710_p13 = pnand %p702_p11, %p433_p12 }
  0x18   : > { %p504_p1 = pneg %p710_p13 }
  0x1a   : > { %p505_p2 = pnand %p504_p1, %p503_p0 }
  0x1c   : > { %p506_p3 = pneg %p505_p2 }
  0x1e   : > { %p511_p6 = pnand %p509_p5, %p506_p3 }
  0x20   : > { %514 = shalt.err (!%p511_p6)
}
  0x21   : > { %s515_s11 = scalar_lea.vmem %s146_s29, 128  ;;  %p523_p8 = scmp.lt.s32.totalorder %s146_s29, %s146_s29 }
  0x22   : > { %p516_p7 = scmp.ne.s32.totalorder %s146_s29, %s515_s11  ;;  %p524_p4 = scmp.lt.s32.totalorder %s515_s11, %s515_s11 }
  0x24   : > { %p518_p9 = pnand %p516_p7, %p504_p1  ;;  %p525_p11 = por %p524_p4, %p523_p8 }
  0x26   : > { %p519_p12 = pneg %p518_p9 }
  0x28   : > { %p526_p10 = pnand %p525_p11, %p519_p12 }
  0x2a   : > { %529 = shalt.err (!%p526_p10)
}
  0x2b   : > { %436 = dma.hbm_to_vmem [thread:$0]  (!%p710_p13), %s797_s1, 128, %s146_s29, [#allocation3]  }
  0x2c   : > { %p809_p0 = scmp.ne.s32.totalorder %s806_s26, 0 }
  0x2d   : > { %p810_p2 = scmp.ne.s32.totalorder (!%p809_p0), %s807_s27, 0 }
  0x2e   : > { %171 = sbr.rel (%p809_p0) target bundleno = 417 (0x1a1), region = 32 }
  0x35   : > { %583 = dma.done.wait (%p810_p2), [#allocation3], 128  }
  0x36   : > { %585 = vsyncadd (%p810_p2), [#allocation3], 4294967168  ;;  %p197_p4 = scmp.lt.s32.totalorder %s604_s15, 1  ;;  %v615_v0 = vmov 0.0|0.0   ;;  %vm616_vm0 = vmmov 0   ;;  %v617_v1 = vmov 0.0  }
  0x37   : > { %423 = vmatprep.subr.bf16.mxu0 %v615_v0  ;;  %420 = vmatprep.mubr.msk.f32.mxu0 %vm616_vm0, %v617_v1  ;;  %v618_v3 = vmov 0   ;;  %v215_v4 = vld [vmem:[%s798_s2] sm:$0xff]  ;;  %s619_s4 = smov 127   ;;  %s620_s5 = smov 126   ;;  %vm212_vm1 = vcmask 1043456   ;;  %vm621_vm2 = vmmov 1  }
  0x38   : > { %s198_s21 = scalar_select %p197_p4, %s604_s15, 1  ;;  %500 = vset.pattern.permute.xlu1 %v618_v3  ;;  %501 = vset.pattern.permute.xlu0 %v618_v3  ;;  %vm425_vm3 = vmpackc.low %vm212_vm1, %vm621_vm2  ;;  %v214_v10 = vld [vmem:[#allocation2] sm:$0xff]  ;;  %vm221_vm4 = vcmask 97280   ;;  %vm298_vm5 = vcmask 130048  }
  0x39   : > { %218 = vperm.xlu1 %500, %v215_v4   ;;  %s194_s6 = sand.u32 1, %s596_s13   ;;  %s410_s8 = sshll.u32 %s604_s15, 7 }
  0x3a   : > { %s406_s23 = sshll.u32 %s198_s21, 2  ;;  %s405_s7 = sshll.u32 %s194_s6, 3 }
  0x3b   : > { %s203_s26 = scalar_lea.vmem %s796_s0, %s406_s23  ;;  %s196_s9 = scalar_lea.vmem [#allocation5], %s405_s7 }
  0x3c   : > { %v204_v2 = vld [vmem:[%s203_s26] sm:$0xf]  ;;  %s315_s10 = sshll.u32 %s196_s9, 4  ;;  %s749_s19 = scalar_lea.hbm %s799_s3, %s410_s8  ;;  %s751_s10 = int_to_ptr.vmem [resolvable:$true] %s315_s10 }
  0x3d   : > { %v206_v5 = vrot.slane %v204_v2, 4  ;;  %s301_s21 = scalar_lea.sflag [#allocation4], %s194_s6  ;;  %s530_s23 = scalar_lea.vmem %s751_s10, 128 }
  0x3e   : > { %p531_p8 = scmp.ne.s32.totalorder %s751_s10, %s530_s23  ;;  %p811_p10 = scmp.ne.s32.totalorder %s804_s22, 0 }
  0x3f   : > { %207 = vrot.lane.b32.xlu0 %v206_v5, %s619_s4  ;;  %s622_s15 = smov [#allocation5]  }
  0x40   : > { %p532_p11 = pnand %p531_p8, %p811_p10  ;;  %s534_s28 = sshll.u32 %s622_s15, 4  ;;  %s535_s28 = int_to_ptr.vmem [resolvable:$false] %s534_s28 }
  0x41   : > { %s536_s29 = scalar_lea.vmem %s535_s28, 256  ;;  %p537_p1 = scmp.lt.s32.totalorder %s751_s10, %s535_s28 }
  0x42   : > { %p533_p13 = pneg %p532_p11  ;;  %p538_p3 = scmp.lt.s32.totalorder %s536_s29, %s530_s23 }
  0x43   : > { %210 = vrot.lane.b32.xlu0 %v204_v2, %s620_s5 }
  0x44   : > { %p539_p5 = por %p538_p3, %p537_p1 }
  0x46   : > { %p540_p6 = pnand %p539_p5, %p533_p13 }
  0xb1   : > { %v208_v6 = vpop.permute.xlu0 %207 }
  0xb2   : > { %v213_v7 = vsel %vm212_vm1, %v204_v2, %v208_v6 }
  0xb5   : > { %v211_v8 = vpop.permute.xlu0 %210 }
  0xb6   : > { %v424_v9 = vpack.c.bf16 %v211_v8, %v213_v7 }
  0xb8   : > { %426 = vmatpush3.bf16.msk.msra.mxu0 %vm425_vm3, %v424_v9  ;;  %v219_v11 = vpop.permute.xlu1 %218 }
  0xbb   : > { %421 = vmatmul.mubr.msk.f32.vlgmr.msra.gmra.mrb[0].mxu0 %vm221_vm4, %v214_v10 }
 0x18e   : > { %v293_v12 = vpop.f32.mrb[0].mxu0 }
 0x18f   : > { %v294_v13 = vadd.f32 %v293_v12, %v219_v11  ;;  %v422_v14 = vpop.f32.mrb[1].mxu0 }
 0x191   : > { %v297_v15 = vmax.f32 %v294_v13, 0.0 }
 0x193   : > { %299 = vst.msk [vmem:[%s196_s9] sm:$0xff] %vm298_vm5, %v297_v15 }
 0x194   : > { %543 = shalt.err (!%p540_p6)
}
 0x195   : > { %s544_s26 = scalar_lea.hbm %s749_s19, 128  ;;  %s548_s4 = scalar_lea.hbm %s799_s3, 256 }
 0x196   : > { %p545_p7 = scmp.ne.s32.totalorder %s749_s19, %s544_s26  ;;  %p549_p0 = scmp.lt.u32.totalorder %s749_s19, %s799_s3 }
 0x197   : > { %p550_p2 = scmp.lt.u32.totalorder %s548_s4, %s544_s26  ;;  %p552_p8 = scmp.lt.u32.totalorder %s544_s26, %s749_s19 }
 0x198   : > { %p546_p9 = pnand %p545_p7, %p811_p10 }
 0x199   : > { %p551_p4 = por %p550_p2, %p549_p0 }
 0x19a   : > { %p547_p12 = pneg %p546_p9 }
 0x19b   : > { %p553_p11 = por %p552_p8, %p551_p4 }
 0x19d   : > { %p554_p13 = pnand %p553_p11, %p547_p12 }
 0x19f   : > { %557 = shalt.err (!%p554_p13)
}
 0x1a0   : > { %431 = dma.vmem_to_hbm [thread:$0]  (%p811_p10), %s751_s10, 128, %s749_s19, %s301_s21  }
 0x1a1 PF: > { %p443_p1 = scmp.ge.s32.totalorder %s612_s17, 2  ;;  %s327_s7 = sand.u32 1, %s592_s12  }
 0x1a2   : > { %p812_p3 = scmp.ne.s32.totalorder %s805_s24, 0  ;;  %s328_s8 = scalar_lea.sflag [#allocation4], %s327_s7 }
 0x1a4   : > { %p438_p5 = pnand %p443_p1, %p812_p3 }
 0x1a6   : > { %587 = dma.done.wait (!%p438_p5), %s328_s8, 128  }
 0x1a7   : > { %589 = vsyncadd (!%p438_p5), %s328_s8, 4294967168  ;;  %s17_s17 = sadd.s32 1, %s612_s17   ;;  %s813_s12 = smov %s596_s13 }
 0x1a8   : > { %p14_p6 = scmp.ge.s32.totalorder %s17_s17, 4   ;;  %s814_s13 = smov %s600_s14 }
 0x1a9   : > { %s815_s14 = smov %s696_s25  ;;  %s816_s15 = smov %s608_s16 }
 0x1aa   : > { %s817_s16 = smov %s819_s20  ;;  %16 = sbr.rel (!%p14_p6) target bundleno = 5 (0x5), region = 72 }
 0x1b1   :  { %333 = vsyncpa [#allocation3], 1 }
 0x1b2   :  { %335 = vsyncpa [#allocation3 + $0x1], 1 }
 0x1b3   :  { %336 = vsyncpa [#allocation4], 1 }
 0x1b4   :  { %338 = vsyncpa [#allocation4 + $0x1], 1 }

</bundles_post_ra>
